<compile_context>
chip_gen: v5e
topology: v5e:2x2
jax: 0.10.0
libtpu: 0.0.40
codegen_flags: <defaults>
</compile_context>

<pallas_src>
import jax
import jax.numpy as jnp
from jax.experimental import pallas as pl
from jax.experimental.pallas import tpu as pltpu

NN_LAYER_1 = 100
NN_LAYER_2 = 100

_LANE = 128      # vreg lane width
_SUBLANE = 8     # vreg sublane count (f32)


def _round_up(n, m):
    return ((n + m - 1) // m) * m


def _mlp_kernel(x_ref, w1_ref, b1_ref, w2_ref, b2_ref, w3_ref, b3_ref, o_ref):
    # fc1 + relu  (MXU matmul, f32 accumulation; bias add in f32 on the VPU)
    h1 = jnp.dot(x_ref[...], w1_ref[...], preferred_element_type=jnp.float32)
    h1 = jnp.maximum(h1 + b1_ref[...], 0.0).astype(w2_ref.dtype)
    # fc2 + relu
    h2 = jnp.dot(h1, w2_ref[...], preferred_element_type=jnp.float32)
    h2 = jnp.maximum(h2 + b2_ref[...], 0.0).astype(w3_ref.dtype)
    # fc_mu + tanh (tanh runs on the EUP)
    mu = jnp.dot(h2, w3_ref[...], preferred_element_type=jnp.float32)
    o_ref[...] = jnp.tanh(mu + b3_ref[...]).astype(o_ref.dtype)


def double_policy_net(x, params, *, act_dim, tile_b=512, use_bf16=True):
    """Forward pass of DoublePolicyNet as a single batch-tiled Pallas call.

    `params` are the 128-padded weights from `init_params`. The output is
    sliced back to (batch, act_dim).
    """
    w1, b1, w2, b2, w3, b3 = params
    batch, state_dim = x.shape
    h1_dim = w1.shape[1]       # 128 (padded NN_LAYER_1)
    h2_dim = w2.shape[1]       # 128 (padded NN_LAYER_2)
    out_pad = w3.shape[1]      # 128 (padded act_dim)

    compute_dtype = jnp.bfloat16 if use_bf16 else jnp.float32
    xc = x.astype(compute_dtype)
    w1c = w1.astype(compute_dtype)
    w2c = w2.astype(compute_dtype)
    w3c = w3.astype(compute_dtype)

    # Batch tiling: sublane-aligned tile, batch padded up to a tile multiple.
    tb = min(tile_b, _round_up(batch, _SUBLANE))
    padded_batch = _round_up(batch, tb)
    if padded_batch != batch:
        xc = jnp.pad(xc, ((0, padded_batch - batch), (0, 0)))
    grid = (padded_batch // tb,)

    flops = 2 * padded_batch * (state_dim * h1_dim + h1_dim * h2_dim
                                + h2_dim * out_pad)
    bytes_accessed = (
        xc.size * xc.dtype.itemsize
        + sum(int(a.size) * a.dtype.itemsize for a in (w1c, b1, w2c, b2, w3c, b3))
        + padded_batch * out_pad * 4
    )
    cost = pl.CostEstimate(flops=int(flops),
                           transcendentals=int(padded_batch * out_pad),
                           bytes_accessed=int(bytes_accessed))

    def weight_spec(a):
        # Constant block index -> weights/biases stay VMEM-resident across
        # all grid steps (no re-DMA per batch tile).
        return pl.BlockSpec(a.shape, lambda i: (0, 0))

    out = pl.pallas_call(
        _mlp_kernel,
        out_shape=jax.ShapeDtypeStruct((padded_batch, out_pad), jnp.float32),
        grid=grid,
        in_specs=[
            pl.BlockSpec((tb, state_dim), lambda i: (i, 0)),   # x batch tile
            weight_spec(w1c), weight_spec(b1),
            weight_spec(w2c), weight_spec(b2),
            weight_spec(w3c), weight_spec(b3),
        ],
        out_specs=pl.BlockSpec((tb, out_pad), lambda i: (i, 0)),
        compiler_params=pltpu.CompilerParams(
            dimension_semantics=("parallel",),
        ),
        cost_estimate=cost,
    )(xc, w1c, b1, w2c, b2, w3c, b3)

    return out[:batch, :act_dim]


def init_params(key, state_dim, act_dim):
    """PyTorch nn.Linear default init (U(+-1/sqrt(fan_in))), zero-padded so
    every output feature dim is a multiple of 128 (lane-dense).

    Padded output columns get zero weights AND zero bias -> ReLU(0) = 0, and
    the padded input rows of the next layer's W are zero, so the padded
    network computes exactly the same function as the unpadded one.
    """
    def linear_init(k, fan_in, fan_out, fan_out_pad):
        kw, kb = jax.random.split(k)
        bound = 1.0 / jnp.sqrt(fan_in)
        w = jax.random.uniform(kw, (fan_in, fan_out), jnp.float32, -bound, bound)
        b = jax.random.uniform(kb, (1, fan_out), jnp.float32, -bound, bound)
        w = jnp.pad(w, ((0, 0), (0, fan_out_pad - fan_out)))
        b = jnp.pad(b, ((0, 0), (0, fan_out_pad - fan_out)))
        return w, b

    h1p = _round_up(NN_LAYER_1, _LANE)
    h2p = _round_up(NN_LAYER_2, _LANE)
    ap = _round_up(act_dim, _LANE)

    k1, k2, k3 = jax.random.split(key, 3)
    w1, b1 = linear_init(k1, state_dim, NN_LAYER_1, h1p)
    w2, b2 = linear_init(k2, NN_LAYER_1, NN_LAYER_2, h2p)
    w3, b3 = linear_init(k3, NN_LAYER_2, act_dim, ap)
    # Pad the input (row) dim of w2 / w3 with zeros to match padded h1 / h2.
    w2 = jnp.pad(w2, ((0, h1p - NN_LAYER_1), (0, 0)))
    w3 = jnp.pad(w3, ((0, h2p - NN_LAYER_2), (0, 0)))
    return (w1, b1, w2, b2, w3, b3)


def reference_forward(x, params, *, act_dim, use_bf16=True):
    """Pure-JAX reference that emulates the kernel's dtype handling."""
    w1, b1, w2, b2, w3, b3 = params
    cd = jnp.bfloat16 if use_bf16 else jnp.float32
    xc = x.astype(cd)
    h1 = jnp.maximum(
        jnp.dot(xc, w1.astype(cd), preferred_element_type=jnp.float32) + b1, 0.0
    ).astype(cd)
    h2 = jnp.maximum(
        jnp.dot(h1, w2.astype(cd), preferred_element_type=jnp.float32) + b2, 0.0
    ).astype(cd)
    mu = jnp.tanh(
        jnp.dot(h2, w3.astype(cd), preferred_element_type=jnp.float32) + b3)
    return mu[:, :act_dim]


def reference_forward_f32(x, params, *, act_dim):
    """Full-precision math reference (for a looser sanity bound on bf16 path)."""
    w1, b1, w2, b2, w3, b3 = params
    h1 = jnp.maximum(x @ w1 + b1, 0.0)
    h2 = jnp.maximum(h1 @ w2 + b2, 0.0)
    return jnp.tanh(h2 @ w3 + b3)[:, :act_dim]


if __name__ == "__main__":
    key = jax.random.PRNGKey(0)
    kx, kp = jax.random.split(key)

    batch, state_dim, act_dim = 2, 32, 8
    x = jax.random.normal(kx, (batch, state_dim), jnp.float32)
    params = init_params(kp, state_dim, act_dim)

    mu = double_policy_net(x, params, act_dim=act_dim)
    jax.block_until_ready(mu)
    assert mu.shape == (batch, act_dim)

    # Check vs a reference that uses the same bf16-operand / f32-accumulate math.
    ref = reference_forward(x, params, act_dim=act_dim)
    assert jnp.allclose(mu, ref, atol=5e-3, rtol=5e-3), \
        float(jnp.max(jnp.abs(mu - ref)))

    # Loose sanity check vs full-f32 math (bounds bf16 rounding error).
    ref32 = reference_forward_f32(x, params, act_dim=act_dim)
    assert jnp.allclose(mu, ref32, atol=5e-2, rtol=5e-2), \
        float(jnp.max(jnp.abs(mu - ref32)))

    print("KERNEL_OK")
</pallas_src>

<mosaic_0001>
module attributes {stable_mosaic.version = 11 : i64} {
  func.func @_mlp_kernel(%arg0: i32, %arg1: memref<8x32xbf16, #tpu.memory_space<vmem>>, %arg2: memref<32x128xbf16, #tpu.memory_space<vmem>>, %arg3: memref<1x128xf32, #tpu.memory_space<vmem>>, %arg4: memref<128x128xbf16, #tpu.memory_space<vmem>>, %arg5: memref<1x128xf32, #tpu.memory_space<vmem>>, %arg6: memref<128x128xbf16, #tpu.memory_space<vmem>>, %arg7: memref<1x128xf32, #tpu.memory_space<vmem>>, %arg8: memref<8x128xf32, #tpu.memory_space<vmem>>) attributes {dimension_semantics = [#tpu.dimension_semantics<parallel>], iteration_bounds = array<i64: 1>, scalar_prefetch = 0 : i64, scratch_operands = 0 : i64, tpu.core_type = #tpu.core_type<tc>, window_params = [{transform_indices = @transform_0, window_bounds = array<i64: 8, 32>}, {pipeline_mode = #tpu.pipeline_mode<synchronous>, transform_indices = @transform_1, window_bounds = array<i64: 32, 128>}, {pipeline_mode = #tpu.pipeline_mode<synchronous>, transform_indices = @transform_2, window_bounds = array<i64: 1, 128>}, {pipeline_mode = #tpu.pipeline_mode<synchronous>, transform_indices = @transform_3, window_bounds = array<i64: 128, 128>}, {pipeline_mode = #tpu.pipeline_mode<synchronous>, transform_indices = @transform_4, window_bounds = array<i64: 1, 128>}, {pipeline_mode = #tpu.pipeline_mode<synchronous>, transform_indices = @transform_5, window_bounds = array<i64: 128, 128>}, {pipeline_mode = #tpu.pipeline_mode<synchronous>, transform_indices = @transform_6, window_bounds = array<i64: 1, 128>}, {transform_indices = @transform_7, window_bounds = array<i64: 8, 128>}]} {
    %c0 = arith.constant 0 : index
    %c0_0 = arith.constant 0 : index
    %0 = vector.load %arg1[%c0, %c0_0] : memref<8x32xbf16, #tpu.memory_space<vmem>>, vector<8x32xbf16>
    %c0_1 = arith.constant 0 : index
    %c0_2 = arith.constant 0 : index
    %1 = vector.load %arg2[%c0_1, %c0_2] : memref<32x128xbf16, #tpu.memory_space<vmem>>, vector<32x128xbf16>
    %cst = arith.constant dense<0.000000e+00> : vector<8x128xf32>
    %2 = tpu.matmul %0, %1, %cst {dimension_numbers = #tpu.dot_dimension_numbers<[1], [0], [0], [1], [0, 0, 1, 1], [], []>} : vector<8x32xbf16>, vector<32x128xbf16>, vector<8x128xf32> -> vector<8x128xf32>
    %c0_3 = arith.constant 0 : index
    %c0_4 = arith.constant 0 : index
    %3 = vector.load %arg3[%c0_3, %c0_4] : memref<1x128xf32, #tpu.memory_space<vmem>>, vector<1x128xf32>
    %4 = vector.broadcast %3 : vector<1x128xf32> to vector<8x128xf32>
    %5 = arith.addf %2, %4 : vector<8x128xf32>
    %cst_5 = arith.constant 0.000000e+00 : f32
    %6 = vector.broadcast %cst_5 : f32 to vector<8x128xf32>
    %7 = arith.maximumf %5, %6 : vector<8x128xf32>
    %8 = arith.truncf %7 : vector<8x128xf32> to vector<8x128xbf16>
    %c0_6 = arith.constant 0 : index
    %c0_7 = arith.constant 0 : index
    %9 = vector.load %arg4[%c0_6, %c0_7] : memref<128x128xbf16, #tpu.memory_space<vmem>>, vector<128x128xbf16>
    %cst_8 = arith.constant dense<0.000000e+00> : vector<8x128xf32>
    %10 = tpu.matmul %8, %9, %cst_8 {dimension_numbers = #tpu.dot_dimension_numbers<[1], [0], [0], [1], [0, 0, 1, 1], [], []>} : vector<8x128xbf16>, vector<128x128xbf16>, vector<8x128xf32> -> vector<8x128xf32>
    %c0_9 = arith.constant 0 : index
    %c0_10 = arith.constant 0 : index
    %11 = vector.load %arg5[%c0_9, %c0_10] : memref<1x128xf32, #tpu.memory_space<vmem>>, vector<1x128xf32>
    %12 = vector.broadcast %11 : vector<1x128xf32> to vector<8x128xf32>
    %13 = arith.addf %10, %12 : vector<8x128xf32>
    %cst_11 = arith.constant 0.000000e+00 : f32
    %14 = vector.broadcast %cst_11 : f32 to vector<8x128xf32>
    %15 = arith.maximumf %13, %14 : vector<8x128xf32>
    %16 = arith.truncf %15 : vector<8x128xf32> to vector<8x128xbf16>
    %c0_12 = arith.constant 0 : index
    %c0_13 = arith.constant 0 : index
    %17 = vector.load %arg6[%c0_12, %c0_13] : memref<128x128xbf16, #tpu.memory_space<vmem>>, vector<128x128xbf16>
    %cst_14 = arith.constant dense<0.000000e+00> : vector<8x128xf32>
    %18 = tpu.matmul %16, %17, %cst_14 {dimension_numbers = #tpu.dot_dimension_numbers<[1], [0], [0], [1], [0, 0, 1, 1], [], []>} : vector<8x128xbf16>, vector<128x128xbf16>, vector<8x128xf32> -> vector<8x128xf32>
    %c0_15 = arith.constant 0 : index
    %c0_16 = arith.constant 0 : index
    %19 = vector.load %arg7[%c0_15, %c0_16] : memref<1x128xf32, #tpu.memory_space<vmem>>, vector<1x128xf32>
    %20 = vector.broadcast %19 : vector<1x128xf32> to vector<8x128xf32>
    %21 = arith.addf %18, %20 : vector<8x128xf32>
    %22 = math.tanh %21 : vector<8x128xf32>
    %c0_17 = arith.constant 0 : index
    %c0_18 = arith.constant 0 : index
    %23 = vector.load %arg8[%c0_17, %c0_18] : memref<8x128xf32, #tpu.memory_space<vmem>>, vector<8x128xf32>
    tpu.vector_store %arg8[%c0_17, %c0_18], %22 {strides = array<i32>} : memref<8x128xf32, #tpu.memory_space<vmem>>, vector<8x128xf32>,
    return
  }
  func.func @transform_0(%arg0: i32) -> (i32, i32) {
    %c0_i32 = arith.constant 0 : i32
    %c0_i32_0 = arith.constant 0 : i32
    return %arg0, %c0_i32 : i32, i32
  }
  func.func @transform_1(%arg0: i32) -> (i32, i32) {
    %c0_i32 = arith.constant 0 : i32
    %c0_i32_0 = arith.constant 0 : i32
    %c0_i32_1 = arith.constant 0 : i32
    return %c0_i32, %c0_i32_0 : i32, i32
  }
  func.func @transform_2(%arg0: i32) -> (i32, i32) {
    %c0_i32 = arith.constant 0 : i32
    %c0_i32_0 = arith.constant 0 : i32
    %c0_i32_1 = arith.constant 0 : i32
    return %c0_i32, %c0_i32_0 : i32, i32
  }
  func.func @transform_3(%arg0: i32) -> (i32, i32) {
    %c0_i32 = arith.constant 0 : i32
    %c0_i32_0 = arith.constant 0 : i32
    %c0_i32_1 = arith.constant 0 : i32
    return %c0_i32, %c0_i32_0 : i32, i32
  }
  func.func @transform_4(%arg0: i32) -> (i32, i32) {
    %c0_i32 = arith.constant 0 : i32
    %c0_i32_0 = arith.constant 0 : i32
    %c0_i32_1 = arith.constant 0 : i32
    return %c0_i32, %c0_i32_0 : i32, i32
  }
  func.func @transform_5(%arg0: i32) -> (i32, i32) {
    %c0_i32 = arith.constant 0 : i32
    %c0_i32_0 = arith.constant 0 : i32
    %c0_i32_1 = arith.constant 0 : i32
    return %c0_i32, %c0_i32_0 : i32, i32
  }
  func.func @transform_6(%arg0: i32) -> (i32, i32) {
    %c0_i32 = arith.constant 0 : i32
    %c0_i32_0 = arith.constant 0 : i32
    %c0_i32_1 = arith.constant 0 : i32
    return %c0_i32, %c0_i32_0 : i32, i32
  }
  func.func @transform_7(%arg0: i32) -> (i32, i32) {
    %c0_i32 = arith.constant 0 : i32
    %c0_i32_0 = arith.constant 0 : i32
    return %arg0, %c0_i32 : i32, i32
  }
}

</mosaic_0001>

<bundles_post_ra>
// kernel: tpu_custom_call.1
= control target key start
LH: loop header
LB: loop body
LE: loop exit
PB: predicated region body
PF: predicated region fallthrough
CT: control target
= control target key end

     0   :  { %12 = vsyncpa [#allocation3], 0  ;;  %s616_s0 = inlined_call_operand.hbm [shape: bf16[8,32], index: 0, kind: input, shape index: {}]   ;;  %s617_s1 = inlined_call_operand.hbm [shape: bf16[32,128], index: 1, kind: input, shape index: {}]   ;;  %s618_s2 = inlined_call_operand.vmem [shape: f32[1,128], index: 2, kind: input, shape index: {}]   ;;  %s619_s3 = inlined_call_operand.hbm [shape: bf16[128,128], index: 3, kind: input, shape index: {}]   ;;  %s620_s4 = inlined_call_operand.vmem [shape: f32[1,128], index: 4, kind: input, shape index: {}]   ;;  %s621_s5 = inlined_call_operand.hbm [shape: bf16[128,128], index: 5, kind: input, shape index: {}]   ;;  %s622_s6 = inlined_call_operand.vmem [shape: f32[1,128], index: 6, kind: input, shape index: {}]   ;;  %s623_s7 = inlined_call_operand.hbm [shape: f32[8,128], index: 7, kind: output, shape index: {}]  }
   0x1   :  { %13 = vsyncpa [#allocation6], 0 }
   0x2   :  { %14 = vsyncpa [#allocation9], 0  ;;  %s31_s26 = sshll.u32 %s617_s1, 4  ;;  %s32_s26 = int_to_ptr.hbm [resolvable:$true] %s31_s26 }
   0x3   :  { %15 = vsyncpa [#allocation4], 0  ;;  %s545_s27 = smov [#allocation5]   ;;  %s21_s8 = sshll.u32 %s616_s0, 4  ;;  %s22_s8 = int_to_ptr.hbm [resolvable:$true] %s21_s8 }
   0x4   :  { %s33_s28 = sshll.u32 %s545_s27, 4  ;;  %s546_s9 = smov 64   ;;  %s34_s28 = int_to_ptr.vmem [resolvable:$true] %s33_s28 }
   0x5   :  { %s547_s10 = smov 4   ;;  %s548_s11 = smov [#allocation2]  }
   0x6   :  { %39 = dma.hbm_to_vmem [thread:$0]  %s32_s26, 256, %s34_s28, [#allocation6], %s546_s9, %s546_s9, %s547_s10  }
   0x7   :  { %s23_s12 = sshll.u32 %s548_s11, 4  ;;  %s46_s15 = sshll.u32 %s619_s3, 4  ;;  %s24_s12 = int_to_ptr.vmem [resolvable:$true] %s23_s12  ;;  %s47_s15 = int_to_ptr.hbm [resolvable:$true] %s46_s15 }
   0x8   :  { %26 = dma.hbm_to_vmem [thread:$0]  %s22_s8, 64, %s24_s12, [#allocation3]  }
   0x9   :  { %s61_s17 = sshll.u32 %s621_s5, 4  ;;  %s549_s18 = smov [#allocation7]   ;;  %s62_s17 = int_to_ptr.hbm [resolvable:$true] %s61_s17 }
   0xa   :  { %s48_s19 = sshll.u32 %s549_s18, 4  ;;  %s550_s0 = smov [#allocation8]   ;;  %s49_s19 = int_to_ptr.vmem [resolvable:$true] %s48_s19 }
   0xb   :  { %54 = dma.hbm_to_vmem [thread:$0]  %s47_s15, 1024, %s49_s19, [#allocation6], %s546_s9, %s546_s9, %s547_s10  }
   0xc   :  { %s63_s20 = sshll.u32 %s550_s0, 4  ;;  %s64_s20 = int_to_ptr.vmem [resolvable:$true] %s63_s20 }
   0xd   :  { %69 = dma.hbm_to_vmem [thread:$0]  %s62_s17, 1024, %s64_s20, [#allocation9], %s546_s9, %s546_s9, %s547_s10  }
   0xe   :  { %537 = dma.done.wait [#allocation3], 64  }
   0xf   :  { %538 = vsyncadd [#allocation3], 4294967232 }
  0x10   :  { %539 = dma.done.wait [#allocation6], 1280  }
  0x11   :  { %540 = vsyncadd [#allocation6], 4294966016 }
  0x12   :  { %541 = dma.done.wait [#allocation9], 1024  }
  0x13   :  { %542 = vsyncadd [#allocation9], 4294966272  ;;  %v388_v0 = vld [vmem:[#allocation5 + $0x8] sm:$0xff]  ;;  %v387_v2 = vld [vmem:[#allocation5] sm:$0xff]  ;;  %vm110_vm0 = vcmask 261120   ;;  %s551_s24 = smov [#allocation10]  }
  0x14   :  { %v396_v1 = vld [vmem:[#allocation7 + $0x38] sm:$0xff]  ;;  %120 = vmatpush.bf16.msra.mxu0 %v388_v0  ;;  %v395_v3 = vld [vmem:[#allocation7 + $0x30] sm:$0xff]  ;;  %v89_v4 = vld [vmem:[#allocation2] sm:$0xf]  ;;  %s300_s25 = sshll.u32 %s551_s24, 4  ;;  %s302_s28 = sshll.u32 %s623_s7, 4  ;;  %s301_s25 = int_to_ptr.vmem [resolvable:$true] %s300_s25  ;;  %s303_s28 = int_to_ptr.hbm [resolvable:$true] %s302_s28 }
  0x15   :  { %197 = vmatpush.bf16.msra.mxu1 %v396_v1  ;;  %v394_v5 = vld [vmem:[#allocation7 + $0x28] sm:$0xff]  ;;  %v393_v6 = vld [vmem:[#allocation7 + $0x20] sm:$0xff]  ;;  %v392_v7 = vld [vmem:[#allocation7 + $0x18] sm:$0xff] }
  0x16   :  { %v391_v8 = vld [vmem:[#allocation7 + $0x10] sm:$0xff]  ;;  %v390_v9 = vld [vmem:[#allocation7 + $0x8] sm:$0xff]  ;;  %v389_v10 = vld [vmem:[#allocation7] sm:$0xff] }
  0x17   :  { %v404_v11 = vld [vmem:[#allocation8 + $0x38] sm:$0xff]  ;;  %v403_v12 = vld [vmem:[#allocation8 + $0x30] sm:$0xff]  ;;  %v402_v13 = vld [vmem:[#allocation8 + $0x28] sm:$0xff] }
  0x18   :  { %121 = vmatpush.bf16.msra.mxu0 %v387_v2  ;;  %280 = vmatpush.bf16.msra.mxu2 %v404_v11  ;;  %v401_v14 = vld [vmem:[#allocation8 + $0x20] sm:$0xff]  ;;  %v400_v15 = vld [vmem:[#allocation8 + $0x18] sm:$0xff]  ;;  %v399_v16 = vld [vmem:[#allocation8 + $0x10] sm:$0xff] }
  0x19   :  { %198 = vmatpush.bf16.msra.mxu1 %v395_v3  ;;  %v412_v17 = vld [vmem:[%s618_s2] ss:$0 sm:$0xff]  ;;  %v397_v24 = vld [vmem:[#allocation8] sm:$0xff] }
  0x1a   :  { %v398_v23 = vld [vmem:[#allocation8 + $0x8] sm:$0xff] }
  0x1b   :  { %322 = vmatmul.msk.bf16.vlgmr.msra.gmra.mxu0 %vm110_vm0, %v89_v4  ;;  %v413_v25 = vld [vmem:[%s620_s4] ss:$0 sm:$0xff] }
  0x1c   :  { %281 = vmatpush.bf16.msra.mxu2 %v403_v12  ;;  %v414_v31 = vld [vmem:[%s622_s6] ss:$0 sm:$0xff] }
  0x1d   :  { %199 = vmatpush.bf16.msra.mxu1 %v394_v5 }
  0x20   :  { %282 = vmatpush.bf16.msra.mxu2 %v402_v13 }
  0x21   :  { %200 = vmatpush.bf16.msra.mxu1 %v393_v6 }
  0x24   :  { %283 = vmatpush.bf16.msra.mxu2 %v401_v14 }
  0x25   :  { %201 = vmatpush.bf16.msra.mxu1 %v392_v7 }
  0x28   :  { %284 = vmatpush.bf16.msra.mxu2 %v400_v15 }
  0x29   :  { %202 = vmatpush.bf16.msra.mxu1 %v391_v8 }
  0x2c   :  { %285 = vmatpush.bf16.msra.mxu2 %v399_v16 }
  0x2d   :  { %203 = vmatpush.bf16.msra.mxu1 %v390_v9 }
  0x30   :  { %286 = vmatpush.bf16.msra.mxu2 %v398_v23 }
  0x31   :  { %204 = vmatpush.bf16.msra.mxu1 %v389_v10 }
  0x34   :  { %287 = vmatpush.bf16.msra.mxu2 %v397_v24 }
  0x98   :  { %v123_v18 = vpop.f32.mrf.mxu0 }
  0x99   :  { %v124_v19 = vadd.f32 %v412_v17, %v123_v18 }
  0x9b   :  { %v127_v20 = vmax.f32 %v124_v19, 0.0 }
  0x9d   :  { %v128_v21 = vpack.c.bf16 %v127_v20, %v127_v20 }
  0x9f   :  { %205 = vmatmul.bf16.vlgmr.msra.gmra.mxu1 %v128_v21 }
  0xa0   :  { %v125_v22 = vpop.f32.mrf.mxu0 }
 0x11c   :  { %v206_v26 = vpop.f32.mrf.mxu1 }
 0x11d   :  { %v207_v27 = vadd.f32 %v413_v25, %v206_v26 }
 0x11f   :  { %v210_v28 = vmax.f32 %v207_v27, 0.0 }
 0x121   :  { %v211_v29 = vpack.c.bf16 %v210_v28, %v210_v28 }
 0x123   :  { %288 = vmatmul.bf16.vlgmr.msra.gmra.mxu2 %v211_v29 }
 0x124   :  { %v208_v30 = vpop.f32.mrf.mxu1 }
 0x1a6   :  { %v289_v32 = vpop.f32.mrf.mxu2 }
 0x1a7   :  { %v290_v33 = vadd.f32 %v414_v31, %v289_v32 }
 0x1a9   :  { %415 = vtanh.f32 %v290_v33 }
 0x1ae   :  { %v291_v34 = vpop.f32.mrf.mxu2 }
 0x1af   :  { %v416_v35 = vpop.eup %415 }
 0x1b0   :  { %294 = vst [vmem:[#allocation10] sm:$0xff] %v416_v35 }
 0x1b1   :  { %305 = dma.vmem_to_hbm [thread:$0]  %s301_s25, 128, %s303_s28, [#allocation4]  }
 0x1b2   :  { %543 = dma.done.wait [#allocation4], 128  }
 0x1b3   :  { %544 = vsyncadd [#allocation4], 4294967168 }
 0x1b4   :  { %310 = vsyncpa [#allocation3], 1 }
 0x1b5   :  { %311 = vsyncpa [#allocation6], 1 }
 0x1b6   :  { %312 = vsyncpa [#allocation9], 1 }
 0x1b7   :  { %313 = vsyncpa [#allocation4], 1 }

</bundles_post_ra>
